<compile_context>
chip_gen: v5e
topology: v5e:2x2
jax: 0.10.0
libtpu: 0.0.40
codegen_flags: <defaults>
</compile_context>

<pallas_src>
import jax
import jax.numpy as jnp
from jax.experimental import pallas as pl
from jax.experimental.pallas import tpu as pltpu


_TILE_TARGET_BYTES = 8 << 20      # per-block target (sweet spot, esp. v7x)
_MIN_BLOCK_BYTES = 1 << 20        # never shrink blocks below ~1 MiB


def _add_pos_enc_kernel(x_ref, pe_ref, o_ref):
    # Broadcast-add of the (1, ...) positional-encoding tile onto the current
    # batch block.  Pure VPU work; the kernel is DMA/HBM bound.
    o_ref[...] = x_ref[...] + pe_ref[...]


def _divisors(n: int):
    return [d for d in range(1, n + 1) if n % d == 0]


def _sublane_multiple(dtype) -> int:
    # Sub-32-bit dtypes pack along sublanes: one vreg holds 8 f32 rows,
    # 16 bf16 rows, 32 int8/fp8 rows.
    itemsize = jnp.dtype(dtype).itemsize
    return {4: 8, 2: 16, 1: 32}.get(itemsize, 8)


def _vmem_budget_bytes() -> int:
    try:
        cap = int(pltpu.get_tpu_info().vmem_capacity_bytes)
    except Exception:
        cap = 64 << 20  # conservative: v7x has 64 MiB VMEM per TensorCore
    # Leave headroom for Mosaic internal scratch; clamp so the same choice is
    # safe on every generation (v5e/v6e: 128 MiB, v7x: 64 MiB).
    return int(min(cap * 3 // 4, 64 << 20))


def _pick_batch_block(B, legal_bbs, per_batch_bytes, block_cap_bytes, target_bytes):
    budget = min(target_bytes, block_cap_bytes)
    fitting = [d for d in legal_bbs if d * per_batch_bytes <= budget]
    bb = max(fitting) if fitting else min(legal_bbs)
    # Prefer an even grid length >= 2 (balanced v7x megacore split, and
    # prefetch/writeback overlap on all chips), but never below ~1 MiB blocks
    # (v5e/v6e measured roofline efficiency collapses for tiny tiles).
    steps = B // bb
    if steps < 2 or steps % 2:
        cands = [d for d in legal_bbs
                 if (B // d) >= 2 and (B // d) % 2 == 0
                 and _MIN_BLOCK_BYTES <= d * per_batch_bytes <= budget]
        if cands:
            bb = max(cands)
    return bb


def positional_encoding_forward(x: jax.Array, pos_enc: jax.Array, *,
                                donate_x: bool = False) -> jax.Array:
    """x: (B, T, D); pos_enc: (1, T, D).  Returns x + pos_enc (eval-mode dropout).

    Set donate_x=True only when the caller truly donates x's buffer
    (e.g. jax.jit donate_argnums); otherwise aliasing forces XLA to insert a
    defensive copy of x (an extra full HBM round trip).
    """
    B, T, D = x.shape
    assert pos_enc.shape == (1, T, D)
    pos_enc = pos_enc.astype(x.dtype)

    itemsize = jnp.dtype(x.dtype).itemsize
    sub_mult = _sublane_multiple(x.dtype)
    vmem_budget = _vmem_budget_bytes()

    use_3d = (D % 128 == 0)

    if use_3d:
        # (bb, T, dd) blocks, no wrapper reshape.  The (8,128) constraint only
        # binds the last two dims: T is always the full dim, dd is a multiple
        # of 128, so bb may be ANY divisor of B here.
        dd_choices = [c for c in _divisors(D) if c % 128 == 0]
        dd = D
        per_batch_bytes = T * D * itemsize
        # Double-buffered x-in + out blocks (4x) + double-buffered pe block,
        # with slack (divide by 5 instead of 4).
        block_cap = max((vmem_budget - 2 * per_batch_bytes) // 5, per_batch_bytes)
        legal_bbs = _divisors(B)
        bb = _pick_batch_block(B, legal_bbs, per_batch_bytes, block_cap,
                               _TILE_TARGET_BYTES)

        # Single batch block -> tile D (multiples of 128) so pipelining /
        # megacore sharding get >= 2 (even) steps, as long as chunks stay
        # >= ~1 MiB.
        if B // bb < 2:
            cands = [c for c in dd_choices
                     if c < D and (D // c) % 2 == 0
                     and bb * T * c * itemsize >= _MIN_BLOCK_BYTES]
            if cands:
                dd = max(cands)
        # Safety: if the block still exceeds the VMEM-derived cap, shrink dd.
        if bb * T * dd * itemsize > block_cap:
            shrink = [c for c in dd_choices if bb * T * c * itemsize <= block_cap]
            if shrink:
                dd = max(shrink)

        block_bytes = bb * T * dd * itemsize
        pe_block_bytes = T * dd * itemsize

        x_in, pe_in = x, pos_enc
        grid = (B // bb, D // dd)
        in_specs = [
            pl.BlockSpec((bb, T, dd), lambda b, d: (b, 0, d)),
            pl.BlockSpec((1, T, dd), lambda b, d: (0, 0, d)),
        ]
        out_specs = pl.BlockSpec((bb, T, dd), lambda b, d: (b, 0, d))
        out_shape = jax.ShapeDtypeStruct((B, T, D), x.dtype)
        needs_reshape = False
    else:
        # Narrow d_model: lane-dense (B, T*D) slab so the output last dim is
        # one long lane axis instead of a masked (< 128) one.
        row = T * D
        per_batch_bytes = row * itemsize
        # bb is the sublane dim of a 2-D block: dtype-aware multiple or full B.
        legal_bbs = [d for d in _divisors(B) if d % sub_mult == 0 or d == B]
        cc_choices = [c for c in _divisors(row) if c % 128 == 0]
        cc = row
        block_cap = max((vmem_budget - 2 * per_batch_bytes) // 5, 1)
        bb = _pick_batch_block(B, legal_bbs, per_batch_bytes, block_cap,
                               _TILE_TARGET_BYTES)

        if B // bb < 2:
            cands = [c for c in cc_choices
                     if c < row and (row // c) % 2 == 0
                     and bb * c * itemsize >= _MIN_BLOCK_BYTES]
            if cands:
                cc = max(cands)
        if bb * cc * itemsize > block_cap:
            shrink = [c for c in cc_choices if bb * c * itemsize <= block_cap]
            if shrink:
                cc = max(shrink)

        block_bytes = bb * cc * itemsize
        pe_block_bytes = cc * itemsize

        x_in = x.reshape(B, row)
        pe_in = pos_enc.reshape(1, row)
        grid = (B // bb, row // cc)
        in_specs = [
            pl.BlockSpec((bb, cc), lambda b, c: (b, c)),
            pl.BlockSpec((1, cc), lambda b, c: (0, c)),
        ]
        out_specs = pl.BlockSpec((bb, cc), lambda b, c: (b, c))
        out_shape = jax.ShapeDtypeStruct((B, row), x.dtype)
        needs_reshape = True

    # Double-buffered x-in + out blocks plus the double-buffered pe block;
    # 2x headroom, clamped into [32 MiB, vmem_budget] (budget already leaves
    # physical headroom on every generation).
    vmem_need = 4 * block_bytes + 2 * pe_block_bytes
    vmem_limit = int(min(max(2 * vmem_need, 32 << 20), vmem_budget))

    cost = pl.CostEstimate(
        flops=B * T * D,
        transcendentals=0,
        bytes_accessed=(2 * B * T * D + T * D) * itemsize,
    )

    out = pl.pallas_call(
        _add_pos_enc_kernel,
        out_shape=out_shape,
        grid_spec=pltpu.PrefetchScalarGridSpec(
            num_scalar_prefetch=0,
            grid=grid,
            in_specs=in_specs,
            out_specs=out_specs,
        ),
        compiler_params=pltpu.CompilerParams(
            dimension_semantics=("parallel",) * len(grid),
            vmem_limit_bytes=vmem_limit,
        ),
        cost_estimate=cost,
        # Only alias when the caller actually donates x; otherwise XLA would
        # insert a defensive copy (extra HBM round trip).
        input_output_aliases={0: 0} if donate_x else {},
    )(x_in, pe_in)

    if needs_reshape:
        out = out.reshape(B, T, D)
    return out


if __name__ == "__main__":
    key = jax.random.PRNGKey(0)
    k1, k2, k3, k4 = jax.random.split(key, 4)

    # Case 1: small d_model (< 128) -> lane-dense 2-D path.
    # PositionalEncoding(d_model, seq_len) holds a (1, seq_len + 1, d_model)
    # parameter and receives (B, seq_len + 1, d_model).
    B, seq_len, d_model = 2, 8, 32
    T = seq_len + 1
    x = jax.random.normal(k1, (B, T, d_model), dtype=jnp.float32)
    pos_enc = jax.random.normal(k2, (1, T, d_model), dtype=jnp.float32)
    out = jax.block_until_ready(positional_encoding_forward(x, pos_enc))
    assert out.shape == (B, T, d_model)
    assert jnp.allclose(out, x + pos_enc, atol=1e-6), "mismatch vs reference (2-D path)"

    # Case 2: d_model multiple of 128 -> native 3-D path (no wrapper reshape),
    # matching the real ViT configuration (d_model=768) at a small scale.
    B2, T2, D2 = 4, 5, 128
    x2 = jax.random.normal(k3, (B2, T2, D2), dtype=jnp.float32)
    pe2 = jax.random.normal(k4, (1, T2, D2), dtype=jnp.float32)
    out2 = jax.block_until_ready(positional_encoding_forward(x2, pe2))
    assert out2.shape == (B2, T2, D2)
    assert jnp.allclose(out2, x2 + pe2, atol=1e-6), "mismatch vs reference (3-D path)"

    print("KERNEL_OK")
</pallas_src>

<mosaic_0001>
module attributes {stable_mosaic.version = 11 : i64} {
  func.func @_add_pos_enc_kernel(%arg0: i32, %arg1: i32, %arg2: memref<2x288xf32, #tpu.memory_space<vmem>>, %arg3: memref<1x288xf32, #tpu.memory_space<vmem>>, %arg4: memref<2x288xf32, #tpu.memory_space<vmem>>) attributes {dimension_semantics = [#tpu.dimension_semantics<parallel>, #tpu.dimension_semantics<parallel>], iteration_bounds = array<i64: 1, 1>, scalar_prefetch = 0 : i64, scratch_operands = 0 : i64, tpu.core_type = #tpu.core_type<tc>, window_params = [{transform_indices = @transform_0, window_bounds = array<i64: 2, 288>}, {transform_indices = @transform_1, window_bounds = array<i64: 1, 288>}, {transform_indices = @transform_2, window_bounds = array<i64: 2, 288>}]} {
    %c0 = arith.constant 0 : index
    %c0_0 = arith.constant 0 : index
    %0 = vector.load %arg2[%c0, %c0_0] : memref<2x288xf32, #tpu.memory_space<vmem>>, vector<2x288xf32>
    %c0_1 = arith.constant 0 : index
    %c0_2 = arith.constant 0 : index
    %1 = vector.load %arg3[%c0_1, %c0_2] : memref<1x288xf32, #tpu.memory_space<vmem>>, vector<1x288xf32>
    %2 = vector.broadcast %1 : vector<1x288xf32> to vector<2x288xf32>
    %3 = arith.addf %0, %2 : vector<2x288xf32>
    %c0_3 = arith.constant 0 : index
    %c0_4 = arith.constant 0 : index
    %4 = vector.load %arg4[%c0_3, %c0_4] : memref<2x288xf32, #tpu.memory_space<vmem>>, vector<2x288xf32>
    tpu.vector_store %arg4[%c0_3, %c0_4], %3 {strides = array<i32>} : memref<2x288xf32, #tpu.memory_space<vmem>>, vector<2x288xf32>,
    return
  }
  func.func @transform_0(%arg0: i32, %arg1: i32) -> (i32, i32) {
    %c0_i32 = arith.constant 0 : i32
    return %arg0, %arg1 : i32, i32
  }
  func.func @transform_1(%arg0: i32, %arg1: i32) -> (i32, i32) {
    %c0_i32 = arith.constant 0 : i32
    %c0_i32_0 = arith.constant 0 : i32
    return %c0_i32, %arg1 : i32, i32
  }
  func.func @transform_2(%arg0: i32, %arg1: i32) -> (i32, i32) {
    %c0_i32 = arith.constant 0 : i32
    return %arg0, %arg1 : i32, i32
  }
}

</mosaic_0001>

<bundles_post_ra>
// kernel: tpu_custom_call.1
= control target key start
LH: loop header
LB: loop body
LE: loop exit
PB: predicated region body
PF: predicated region fallthrough
CT: control target
= control target key end

     0   :  { %7 = vsyncpa [#allocation3], 0  ;;  %s185_s0 = inlined_call_operand.hbm [shape: f32[2,288], index: 0, kind: input, shape index: {}]   ;;  %s186_s1 = inlined_call_operand.hbm [shape: f32[1,288], index: 1, kind: input, shape index: {}]   ;;  %s187_s2 = inlined_call_operand.hbm [shape: f32[2,288], index: 2, kind: output, shape index: {}]  }
   0x1   :  { %8 = vsyncpa [#allocation6], 0 }
   0x2   :  { %9 = vsyncpa [#allocation4], 0  ;;  %s15_s11 = sshll.u32 %s185_s0, 4  ;;  %s158_s12 = smov [#allocation2]   ;;  %s16_s11 = int_to_ptr.hbm [resolvable:$true] %s15_s11 }
   0x3   :  { %s17_s13 = sshll.u32 %s158_s12, 4  ;;  %s26_s16 = sshll.u32 %s186_s1, 4  ;;  %s18_s13 = int_to_ptr.vmem [resolvable:$true] %s17_s13  ;;  %s27_s16 = int_to_ptr.hbm [resolvable:$true] %s26_s16 }
   0x4   :  { %20 = dma.hbm_to_vmem [thread:$0]  %s16_s11, 96, %s18_s13, [#allocation3]  }
   0x5   :  { %s159_s17 = smov [#allocation5]  }
   0x6   :  { %s28_s18 = sshll.u32 %s159_s17, 4  ;;  %s29_s18 = int_to_ptr.vmem [resolvable:$true] %s28_s18 }
   0x7   :  { %31 = dma.hbm_to_vmem [thread:$0]  %s27_s16, 48, %s29_s18, [#allocation6]  }
   0x8   :  { %152 = dma.done.wait [#allocation3], 96  }
   0x9   :  { %153 = vsyncadd [#allocation3], 4294967200 }
   0xa   :  { %154 = dma.done.wait [#allocation6], 48  }
   0xb   :  { %155 = vsyncadd [#allocation6], 4294967248  ;;  %v41_v0 = vld [vmem:[#allocation5] sm:$0x7]  ;;  %vm54_vm0 = vcmask 1043458   ;;  %vm48_vm1 = vcmask 1041408  }
   0xc   :  { %v43_v1 = vperm.slane %v41_v0, 0  ;;  %v44_v2 = vperm.slane %v41_v0, 1  ;;  %v45_v3 = vperm.slane %v41_v0, 2  ;;  %vm50_vm2 = vcmask 1043456   ;;  %vm55_vm3 = vmor %vm54_vm0, %vm48_vm1  ;;  %v40_v6 = vld [vmem:[#allocation2] sm:$0x3f] }
   0xd   :  { %vm56_vm4 = vcmask 259076   ;;  %s160_s0 = smov [#allocation7]   ;;  %s66_s21 = sshll.u32 %s187_s2, 4  ;;  %s67_s21 = int_to_ptr.hbm [resolvable:$true] %s66_s21 }
   0xe   :  { %v46_v4 = vrot.slane %v44_v2, 6  ;;  %v47_v5 = vrot.slane %v45_v3, 4  ;;  %s64_s1 = sshll.u32 %s160_s0, 4  ;;  %vm57_vm5 = vmor %vm56_vm4, %vm55_vm3  ;;  %s65_s1 = int_to_ptr.vmem [resolvable:$true] %s64_s1 }
  0x10   :  { %v49_v7 = vsel %vm48_vm1, %v43_v1, %v46_v4 }
  0x11   :  { %v51_v8 = vsel %vm50_vm2, %v49_v7, %v47_v5 }
  0x12   :  { %v53_v9 = vadd.f32 %v51_v8, %v40_v6 }
  0x14   :  { %58 = vst.msk [vmem:[#allocation7] sm:$0x3f] %vm57_vm5, %v53_v9 }
  0x15   :  { %69 = dma.vmem_to_hbm [thread:$0]  %s65_s1, 96, %s67_s21, [#allocation4]  }
  0x16   :  { %156 = dma.done.wait [#allocation4], 96  }
  0x17   :  { %157 = vsyncadd [#allocation4], 4294967200 }
  0x18   :  { %74 = vsyncpa [#allocation3], 1 }
  0x19   :  { %75 = vsyncpa [#allocation6], 1 }
  0x1a   :  { %76 = vsyncpa [#allocation4], 1 }

</bundles_post_ra>
